<compile_context>
chip_gen: v7x
topology: tpu7x:2x2x1
jax: 0.10.0
libtpu: 0.0.40
codegen_flags: <defaults>
</compile_context>

<pallas_src>
import jax
import jax.numpy as jnp
from jax.experimental import pallas as pl
from jax.experimental.pallas import tpu as pltpu


def critic_kernel(obs_ref, w1t_ref, b1_ref, w2t_ref, b2_ref, w3_ref, b3_ref, out_ref):
    obs = obs_ref[...]                      # (3, TILE_B) f32, batch on lanes
    w1t = w1t_ref[...]                      # (64, 3)     f32

    # Layer 1: contraction dim K=3 -> three VPU outer-product FMAs (skip the MXU).
    h1 = (w1t[:, 0:1] * obs[0:1, :]
          + w1t[:, 1:2] * obs[1:2, :]
          + w1t[:, 2:3] * obs[2:3, :]
          + b1_ref[...])                    # (64, TILE_B)
    h1 = jnp.maximum(h1, 0.0)

    # Layer 2: the only well-shaped matmul (64x64) -> MXU, f32 accumulation,
    # batch sits on the lane (N) axis of the MXU result.
    h2 = jnp.dot(w2t_ref[...], h1, preferred_element_type=jnp.float32)
    h2 = jnp.maximum(h2 + b2_ref[...], 0.0)  # (64, TILE_B)

    # Layer 3: output width N=1 -> VPU multiply + sublane reduction (XLU),
    # scalar bias from SMEM.  Result is already a lane-dense (1, TILE_B) row.
    v = jnp.sum(h2 * w3_ref[...], axis=0, keepdims=True) + b3_ref[0, 0]
    out_ref[...] = v.astype(out_ref.dtype)


def _round_up(x, m):
    return ((x + m - 1) // m) * m


def critic_forward(obs, params, *, tile_b_max=4096):
    """Full Critic forward pass as a single batch-tiled Pallas TPU kernel.

    obs: [B, 3] float32
    returns: tuple with one element, value of shape [B, 1] (matches PyTorch forward).
    """
    w1, b1, w2, b2, w3, b3 = params
    B = obs.shape[0]

    # Batch tile selection (batch lives on the lane axis -> 128 quantum):
    #   * B <= 128: single full-extent tile (full-array-dim exception to the 128 rule).
    #   * 128 < B <= tile_b_max: split into >= 2 tiles so both v7x TensorCores get work.
    #   * B > tile_b_max: cap at tile_b_max (multiple of 128).
    if B > tile_b_max:
        tile_b = tile_b_max
    elif B > 128:
        tile_b = _round_up(pl.cdiv(B, 2), 128)
    else:
        tile_b = B
    n_tiles = pl.cdiv(B, tile_b)
    b_pad = n_tiles * tile_b

    # Layout plumbing in the wrapper: transpose obs so batch is the last (lane) axis;
    # the ragged-tail zero-pad fuses into the same op (no separate HBM pass).
    obs_t = jnp.transpose(obs)               # (3, B)
    if b_pad != B:
        obs_t = jnp.pad(obs_t, ((0, 0), (0, b_pad - B)))

    w1t = jnp.transpose(w1)                  # (64, 3)
    b1c = b1.reshape(64, 1)                  # column -> lane broadcast
    w2t = jnp.transpose(w2)                  # (64, 64)
    b2c = b2.reshape(64, 1)
    w3c = w3.reshape(64, 1)                  # output weights as a column (sublane reduce)
    b3s = b3.reshape(1, 1)                   # scalar bias -> SMEM

    resident = lambda shape: pl.BlockSpec(shape, lambda i: (0, 0))  # stays in VMEM across steps

    value_row = pl.pallas_call(
        critic_kernel,
        out_shape=jax.ShapeDtypeStruct((1, b_pad), jnp.float32),
        grid=(n_tiles,),
        in_specs=[
            pl.BlockSpec((3, tile_b), lambda i: (0, i)),       # obs^T: tiled over batch (lanes)
            resident(w1t.shape),                               # (64, 3)
            resident(b1c.shape),                               # (64, 1)
            resident(w2t.shape),                               # (64, 64)
            resident(b2c.shape),                               # (64, 1)
            resident(w3c.shape),                               # (64, 1)
            pl.BlockSpec(memory_space=pltpu.MemorySpace.SMEM), # b3 scalar in SMEM
        ],
        out_specs=pl.BlockSpec((1, tile_b), lambda i: (0, i)),  # lane-dense output row
        compiler_params=pltpu.CompilerParams(
            dimension_semantics=("parallel",),
        ),
    )(obs_t, w1t, b1c, w2t, b2c, w3c, b3s)

    value = value_row[0, :B].reshape(B, 1)
    return (value,)


def init_params(key):
    """Deterministic init mimicking PyTorch nn.Linear default U(-1/sqrt(fan_in), +1/sqrt(fan_in))."""
    def linear(key, fan_in, fan_out):
        kw, kb = jax.random.split(key)
        bound = 1.0 / jnp.sqrt(fan_in)
        w = jax.random.uniform(kw, (fan_in, fan_out), jnp.float32, -bound, bound)
        b = jax.random.uniform(kb, (1, fan_out), jnp.float32, -bound, bound)
        return w, b

    k1, k2, k3 = jax.random.split(key, 3)
    w1, b1 = linear(k1, 3, 64)
    w2, b2 = linear(k2, 64, 64)
    w3, b3 = linear(k3, 64, 1)
    return (w1, b1, w2, b2, w3, b3)


if __name__ == "__main__":
    key = jax.random.PRNGKey(0)
    k_params, k_obs = jax.random.split(key)

    params = init_params(k_params)
    obs = jax.random.normal(k_obs, (8, 3), dtype=jnp.float32)  # batch=8, obs_dim=3

    (value,) = critic_forward(obs, params)
    value = jax.block_until_ready(value)

    # Pure-JAX reference of the same math.
    w1, b1, w2, b2, w3, b3 = params
    ref = jnp.maximum(obs @ w1 + b1, 0.0)
    ref = jnp.maximum(ref @ w2 + b2, 0.0)
    ref = ref @ w3 + b3
    assert value.shape == (8, 1)
    assert jnp.allclose(value, ref, atol=1e-5, rtol=1e-5)

    print("KERNEL_OK")
</pallas_src>

<mosaic_0001>
module attributes {stable_mosaic.version = 11 : i64} {
  func.func @critic_kernel(%arg0: i32, %arg1: memref<3x8xf32, #tpu.memory_space<vmem>>, %arg2: memref<64x3xf32, #tpu.memory_space<vmem>>, %arg3: memref<64x1xf32, #tpu.memory_space<vmem>>, %arg4: memref<64x64xf32, #tpu.memory_space<vmem>>, %arg5: memref<64x1xf32, #tpu.memory_space<vmem>>, %arg6: memref<64x1xf32, #tpu.memory_space<vmem>>, %arg7: memref<1x1xf32, #tpu.memory_space<smem>>, %arg8: memref<1x8xf32, #tpu.memory_space<vmem>>) attributes {dimension_semantics = [#tpu.dimension_semantics<parallel>], iteration_bounds = array<i64: 1>, scalar_prefetch = 0 : i64, scratch_operands = 0 : i64, tpu.core_type = #tpu.core_type<tc>, window_params = [{transform_indices = @transform_0, window_bounds = array<i64: 3, 8>}, {pipeline_mode = #tpu.pipeline_mode<synchronous>, transform_indices = @transform_1, window_bounds = array<i64: 64, 3>}, {pipeline_mode = #tpu.pipeline_mode<synchronous>, transform_indices = @transform_2, window_bounds = array<i64: 64, 1>}, {pipeline_mode = #tpu.pipeline_mode<synchronous>, transform_indices = @transform_3, window_bounds = array<i64: 64, 64>}, {pipeline_mode = #tpu.pipeline_mode<synchronous>, transform_indices = @transform_4, window_bounds = array<i64: 64, 1>}, {pipeline_mode = #tpu.pipeline_mode<synchronous>, transform_indices = @transform_5, window_bounds = array<i64: 64, 1>}, {transform_indices = @transform_6, window_bounds = array<i64: 1, 1>}, {transform_indices = @transform_7, window_bounds = array<i64: 1, 8>}]} {
    %c0 = arith.constant 0 : index
    %c0_0 = arith.constant 0 : index
    %0 = vector.load %arg1[%c0, %c0_0] : memref<3x8xf32, #tpu.memory_space<vmem>>, vector<3x8xf32>
    %c0_1 = arith.constant 0 : index
    %c0_2 = arith.constant 0 : index
    %1 = vector.load %arg2[%c0_1, %c0_2] : memref<64x3xf32, #tpu.memory_space<vmem>>, vector<64x3xf32>
    %2 = vector.extract_strided_slice %1 {offsets = [0, 0], sizes = [64, 1], strides = [1, 1]} : vector<64x3xf32> to vector<64x1xf32>
    %3 = vector.extract_strided_slice %0 {offsets = [0, 0], sizes = [1, 8], strides = [1, 1]} : vector<3x8xf32> to vector<1x8xf32>
    %4 = vector.broadcast %2 : vector<64x1xf32> to vector<64x8xf32>
    %5 = vector.broadcast %3 : vector<1x8xf32> to vector<64x8xf32>
    %6 = arith.mulf %4, %5 : vector<64x8xf32>
    %7 = vector.extract_strided_slice %1 {offsets = [0, 1], sizes = [64, 1], strides = [1, 1]} : vector<64x3xf32> to vector<64x1xf32>
    %8 = vector.extract_strided_slice %0 {offsets = [1, 0], sizes = [1, 8], strides = [1, 1]} : vector<3x8xf32> to vector<1x8xf32>
    %9 = vector.broadcast %7 : vector<64x1xf32> to vector<64x8xf32>
    %10 = vector.broadcast %8 : vector<1x8xf32> to vector<64x8xf32>
    %11 = arith.mulf %9, %10 : vector<64x8xf32>
    %12 = arith.addf %6, %11 : vector<64x8xf32>
    %13 = vector.extract_strided_slice %1 {offsets = [0, 2], sizes = [64, 1], strides = [1, 1]} : vector<64x3xf32> to vector<64x1xf32>
    %14 = vector.extract_strided_slice %0 {offsets = [2, 0], sizes = [1, 8], strides = [1, 1]} : vector<3x8xf32> to vector<1x8xf32>
    %15 = vector.broadcast %13 : vector<64x1xf32> to vector<64x8xf32>
    %16 = vector.broadcast %14 : vector<1x8xf32> to vector<64x8xf32>
    %17 = arith.mulf %15, %16 : vector<64x8xf32>
    %18 = arith.addf %12, %17 : vector<64x8xf32>
    %c0_3 = arith.constant 0 : index
    %c0_4 = arith.constant 0 : index
    %19 = vector.load %arg3[%c0_3, %c0_4] : memref<64x1xf32, #tpu.memory_space<vmem>>, vector<64x1xf32>
    %20 = vector.broadcast %19 : vector<64x1xf32> to vector<64x8xf32>
    %21 = arith.addf %18, %20 : vector<64x8xf32>
    %cst = arith.constant 0.000000e+00 : f32
    %22 = vector.broadcast %cst : f32 to vector<64x8xf32>
    %23 = arith.maximumf %21, %22 : vector<64x8xf32>
    %c0_5 = arith.constant 0 : index
    %c0_6 = arith.constant 0 : index
    %24 = vector.load %arg4[%c0_5, %c0_6] : memref<64x64xf32, #tpu.memory_space<vmem>>, vector<64x64xf32>
    %cst_7 = arith.constant dense<0.000000e+00> : vector<64x8xf32>
    %25 = tpu.matmul %24, %23, %cst_7 {dimension_numbers = #tpu.dot_dimension_numbers<[1], [0], [0], [1], [0, 0, 1, 1], [], []>} : vector<64x64xf32>, vector<64x8xf32>, vector<64x8xf32> -> vector<64x8xf32>
    %c0_8 = arith.constant 0 : index
    %c0_9 = arith.constant 0 : index
    %26 = vector.load %arg5[%c0_8, %c0_9] : memref<64x1xf32, #tpu.memory_space<vmem>>, vector<64x1xf32>
    %27 = vector.broadcast %26 : vector<64x1xf32> to vector<64x8xf32>
    %28 = arith.addf %25, %27 : vector<64x8xf32>
    %cst_10 = arith.constant 0.000000e+00 : f32
    %29 = vector.broadcast %cst_10 : f32 to vector<64x8xf32>
    %30 = arith.maximumf %28, %29 : vector<64x8xf32>
    %c0_11 = arith.constant 0 : index
    %c0_12 = arith.constant 0 : index
    %31 = vector.load %arg6[%c0_11, %c0_12] : memref<64x1xf32, #tpu.memory_space<vmem>>, vector<64x1xf32>
    %32 = vector.broadcast %31 : vector<64x1xf32> to vector<64x8xf32>
    %33 = arith.mulf %30, %32 : vector<64x8xf32>
    %cst_13 = arith.constant dense<0.000000e+00> : vector<8xf32>
    %34 = vector.multi_reduction <add>, %33, %cst_13 [0] : vector<64x8xf32> to vector<8xf32>
    %35 = vector.shape_cast %34 : vector<8xf32> to vector<1x8xf32>
    %c0_14 = arith.constant 0 : index
    %c0_15 = arith.constant 0 : index
    %36 = memref.load %arg7[%c0_14, %c0_15] : memref<1x1xf32, #tpu.memory_space<smem>>
    %37 = vector.broadcast %36 : f32 to vector<1x8xf32>
    %38 = arith.addf %35, %37 : vector<1x8xf32>
    %c0_16 = arith.constant 0 : index
    %c0_17 = arith.constant 0 : index
    %39 = vector.load %arg8[%c0_16, %c0_17] : memref<1x8xf32, #tpu.memory_space<vmem>>, vector<1x8xf32>
    tpu.vector_store %arg8[%c0_16, %c0_17], %38 {strides = array<i32>} : memref<1x8xf32, #tpu.memory_space<vmem>>, vector<1x8xf32>,
    return
  }
  func.func @transform_0(%arg0: i32) -> (i32, i32) {
    %c0_i32 = arith.constant 0 : i32
    %c0_i32_0 = arith.constant 0 : i32
    return %c0_i32, %arg0 : i32, i32
  }
  func.func @transform_1(%arg0: i32) -> (i32, i32) {
    %c0_i32 = arith.constant 0 : i32
    %c0_i32_0 = arith.constant 0 : i32
    %c0_i32_1 = arith.constant 0 : i32
    return %c0_i32, %c0_i32_0 : i32, i32
  }
  func.func @transform_2(%arg0: i32) -> (i32, i32) {
    %c0_i32 = arith.constant 0 : i32
    %c0_i32_0 = arith.constant 0 : i32
    %c0_i32_1 = arith.constant 0 : i32
    return %c0_i32, %c0_i32_0 : i32, i32
  }
  func.func @transform_3(%arg0: i32) -> (i32, i32) {
    %c0_i32 = arith.constant 0 : i32
    %c0_i32_0 = arith.constant 0 : i32
    %c0_i32_1 = arith.constant 0 : i32
    return %c0_i32, %c0_i32_0 : i32, i32
  }
  func.func @transform_4(%arg0: i32) -> (i32, i32) {
    %c0_i32 = arith.constant 0 : i32
    %c0_i32_0 = arith.constant 0 : i32
    %c0_i32_1 = arith.constant 0 : i32
    return %c0_i32, %c0_i32_0 : i32, i32
  }
  func.func @transform_5(%arg0: i32) -> (i32, i32) {
    %c0_i32 = arith.constant 0 : i32
    %c0_i32_0 = arith.constant 0 : i32
    %c0_i32_1 = arith.constant 0 : i32
    return %c0_i32, %c0_i32_0 : i32, i32
  }
  func.func @transform_6(%arg0: i32) -> (i32, i32) {
    %c0_i32 = arith.constant 0 : i32
    %c0_i32_0 = arith.constant 0 : i32
    %c0_i32_1 = arith.constant 0 : i32
    return %c0_i32, %c0_i32_0 : i32, i32
  }
  func.func @transform_7(%arg0: i32) -> (i32, i32) {
    %c0_i32 = arith.constant 0 : i32
    %c0_i32_0 = arith.constant 0 : i32
    return %c0_i32, %arg0 : i32, i32
  }
}

</mosaic_0001>

<bundles_post_ra>
// kernel: tpu_custom_call.1
= control target key start
LH: loop header
LB: loop body
LE: loop exit
PB: predicated region body
PF: predicated region fallthrough
CT: control target
= control target key end

     0   :  { %v667_v1 = vmov 2   ;;  %v668_v2 = vmov 1   ;;  %s914_s0 = inlined_call_operand.vmem [shape: f32[3,8], index: 0, kind: input, shape index: {}]   ;;  %s915_s1 = inlined_call_operand.vmem [shape: f32[64,3], index: 1, kind: input, shape index: {}]   ;;  %s916_s2 = inlined_call_operand.vmem [shape: f32[64,1], index: 2, kind: input, shape index: {}]   ;;  %s917_s3 = inlined_call_operand.vmem [shape: f32[64,64], index: 3, kind: input, shape index: {}]   ;;  %s918_s4 = inlined_call_operand.vmem [shape: f32[64,1], index: 4, kind: input, shape index: {}]   ;;  %s919_s5 = inlined_call_operand.vmem [shape: f32[64,1], index: 5, kind: input, shape index: {}]   ;;  %s920_s6 = inlined_call_operand.<no memory space> [shape: f32[1,1], index: 6, kind: input, shape index: {}]   ;;  %s921_s7 = inlined_call_operand.hbm [shape: f32[1,8], index: 7, kind: output, shape index: {}]  }
   0x1   :  { %v29_v0 = vld [vmem:[%s915_s1] sm:$0xff]  ;;  %629 = vset.pattern.permute.xlu0 %v667_v1  ;;  %628 = vset.pattern.permute.xlu1 %v668_v2  ;;  %v31_v3 = vld [vmem:[%s915_s1 + $0x10] sm:$0xff]  ;;  %v30_v4 = vld [vmem:[%s915_s1 + $0x8] sm:$0xff] }
   0x2   :  { %142 = vperm.xlu0 %629, %v29_v0   ;;  %90 = vperm.xlu1 %628, %v29_v0   ;;  %v34_v5 = vld [vmem:[%s915_s1 + $0x28] sm:$0xff] }
   0x6   :  { %150 = vperm.xlu0 %629, %v31_v3   ;;  %94 = vperm.xlu1 %628, %v30_v4  }
   0xa   :  { %162 = vperm.xlu0 %629, %v34_v5   ;;  %630 = vset.pattern.permute.xlu1 %v667_v1 }
   0xb   :  { %146 = vperm.xlu1 %630, %v30_v4  }
   0xc   :  { %13 = vsyncpa [#allocation4], 0  ;;  %v33_v6 = vld [vmem:[%s915_s1 + $0x20] sm:$0xff]  ;;  %v669_v7 = vmov 0   ;;  %v36_v8 = vld [vmem:[%s915_s1 + $0x38] sm:$0xff]  ;;  %vm313_vm0 = vcmask 523264   ;;  %v77_v43 = vlaneseq }
   0xd   :  { %v32_v9 = vld [vmem:[%s915_s1 + $0x18] sm:$0xff]  ;;  %v193_v10 = vld [vmem:[%s916_s2] sm:$0xff]  ;;  %v194_v11 = vld [vmem:[%s916_s2 + $0x8] sm:$0xff]  ;;  %vm507_vm1 = vcmask 64512   ;;  %s670_s8 = smov [#allocation3]   ;;  %vm532_vm2 = vcmask 57344  }
   0xe   :  { %637 = vset.pattern.permute.xlu0 %v668_v2  ;;  %v35_v12 = vld [vmem:[%s915_s1 + $0x30] sm:$0xff]  ;;  %v197_v13 = vld [vmem:[%s916_s2 + $0x20] sm:$0xff]  ;;  %v200_v14 = vld [vmem:[%s916_s2 + $0x38] sm:$0xff]  ;;  %v78_v45 = vshrl.u32 %v77_v43, 7 }
   0xf   :  { %106 = vperm.xlu0 %637, %v33_v6   ;;  %631 = vset.pattern.permute.xlu1 %v669_v7  ;;  %v266_v15 = vld [vmem:[%s918_s4 + $0x8] sm:$0xff]  ;;  %v268_v16 = vld [vmem:[%s918_s4 + $0x18] sm:$0xff]  ;;  %v195_v17 = vld [vmem:[%s916_s2 + $0x10] sm:$0xff] }
  0x10   :  { %49 = vperm.xlu1 %631, %v31_v3   ;;  %v452_v18 = vld [vmem:[%s919_s5 + $0x8] sm:$0xff]  ;;  %v196_v19 = vld [vmem:[%s916_s2 + $0x18] sm:$0xff]  ;;  %v453_v20 = vld [vmem:[%s919_s5 + $0x10] sm:$0xff]  ;;  %v123_v48 = vsub.s32 1, %v78_v45  ;;  %v79_v49 = vsub.s32 0, %v78_v45  ;;  %v175_v53 = vsub.s32 2, %v78_v45 }
  0x11   :  { %v454_v21 = vld [vmem:[%s919_s5 + $0x18] sm:$0xff]  ;;  %v455_v22 = vld [vmem:[%s919_s5 + $0x20] sm:$0xff]  ;;  %v456_v23 = vld [vmem:[%s919_s5 + $0x28] sm:$0xff] }
  0x12   :  { %v458_v24 = vld [vmem:[%s919_s5 + $0x38] sm:$0xff]  ;;  %v198_v25 = vld [vmem:[%s916_s2 + $0x28] sm:$0xff]  ;;  %v199_v26 = vld [vmem:[%s916_s2 + $0x30] sm:$0xff]  ;;  %s540_s2 = sshll.u32 %s670_s8, 4  ;;  %s541_s2 = int_to_ptr.vmem [resolvable:$true] %s540_s2 }
  0x13   :  { %118 = vperm.xlu0 %637, %v36_v8   ;;  %v265_v27 = vld [vmem:[%s918_s4] sm:$0xff]  ;;  %v267_v28 = vld [vmem:[%s918_s4 + $0x10] sm:$0xff]  ;;  %v270_v33 = vld [vmem:[%s918_s4 + $0x28] sm:$0xff]  ;;  %s643_s9 = scalar_lea.vmem %s541_s2, 16  ;;  %s647_s10 = scalar_lea.vmem %s541_s2, 32 }
  0x14   :  { %632 = vset.pattern.permute.xlu1 %v668_v2  ;;  %v257_v29 = vld [vmem:[%s917_s3] sm:$0xff]  ;;  %v271_v34 = vld [vmem:[%s918_s4 + $0x30] sm:$0xff]  ;;  %v272_v35 = vld [vmem:[%s918_s4 + $0x38] sm:$0xff]  ;;  %p644_p0 = scmp.ne.s32.totalorder %s541_s2, %s643_s9  ;;  %p648_p1 = scmp.lt.s32.totalorder %s541_s2, %s541_s2 }
  0x15   :  { %98 = vperm.xlu1 %632, %v31_v3   ;;  %v261_v30 = vld [vmem:[%s917_s3 + $0x20] sm:$0xff]  ;;  %588 = vmatprep.mubr.msk.f32.mxu0 %vm313_vm0, %v257_v29  ;;  %v457_v36 = vld [vmem:[%s919_s5 + $0x30] sm:$0xff]  ;;  %p649_p2 = scmp.lt.s32.totalorder %s647_s10, %s643_s9 }
  0x16   :  { %v451_v31 = vld [vmem:[%s919_s5] sm:$0xff]  ;;  %594 = vmatprep.mubr.msk.f32.mxu1 %vm313_vm0, %v261_v30 }
  0x17   :  { %640 = vset.pattern.permute.xlu0 %v669_v7  ;;  %v269_v32 = vld [vmem:[%s918_s4 + $0x20] sm:$0xff]  ;;  %p650_p3 = por %p649_p2, %p648_p1 }
  0x18   :  { %39 = vperm.xlu0 %640, %v29_v0   ;;  %v28_v50 = vld [vmem:[%s914_s0] sm:$0x7] }
  0x19   :  { %102 = vperm.xlu1 %632, %v32_v9   ;;  %v834_v52 = vrot.slane %v28_v50, %v123_v48  ;;  %v836_v54 = vrot.slane %v28_v50, %v79_v49  ;;  %v840_v59 = vrot.slane %v28_v50, %v175_v53  ;;  %p651_p4 = pnand %p650_p3, %p644_p0 }
  0x1c   :  { %44 = vperm.xlu0 %640, %v30_v4  }
  0x1d   :  { %633 = vset.pattern.permute.xlu1 %v667_v1 }
  0x1e   :  { %154 = vperm.xlu1 %633, %v32_v9  }
  0x20   :  { %54 = vperm.xlu0 %640, %v32_v9  }
  0x22   :  { %634 = vset.pattern.permute.xlu1 %v669_v7 }
  0x23   :  { %203 = vperm.xlu1 %634, %v193_v10  }
  0x24   :  { %208 = vperm.xlu0 %640, %v194_v11  }
  0x27   :  { %59 = vperm.xlu1 %634, %v33_v6  }
  0x28   :  { %69 = vperm.xlu0 %640, %v35_v12  }
  0x2b   :  { %64 = vperm.xlu1 %634, %v34_v5  }
  0x2c   :  { %223 = vperm.xlu0 %640, %v197_v13  }
  0x2f   :  { %635 = vset.pattern.permute.xlu1 %v668_v2 }
  0x30   :  { %238 = vperm.xlu0 %640, %v200_v14   ;;  %110 = vperm.xlu1 %635, %v34_v5  }
  0x34   :  { %280 = vperm.xlu0 %640, %v266_v15   ;;  %636 = vset.pattern.permute.xlu1 %v667_v1 }
  0x35   :  { %158 = vperm.xlu1 %636, %v33_v6  }
  0x38   :  { %290 = vperm.xlu0 %640, %v268_v16  }
  0x39   :  { %638 = vset.pattern.permute.xlu1 %v669_v7 }
  0x3a   :  { %213 = vperm.xlu1 %638, %v195_v17  }
  0x3c   :  { %466 = vperm.xlu0 %640, %v452_v18  }
  0x3e   :  { %218 = vperm.xlu1 %638, %v196_v19  }
  0x40   :  { %471 = vperm.xlu0 %640, %v453_v20  }
  0x42   :  { %74 = vperm.xlu1 %638, %v36_v8  }
  0x44   :  { %476 = vperm.xlu0 %640, %v454_v21  }
  0x46   :  { %639 = vset.pattern.permute.xlu1 %v668_v2 }
  0x47   :  { %114 = vperm.xlu1 %639, %v35_v12  }
  0x48   :  { %481 = vperm.xlu0 %640, %v455_v22  }
  0x4b   :  { %641 = vset.pattern.permute.xlu1 %v667_v1 }
  0x4c   :  { %486 = vperm.xlu0 %640, %v456_v23   ;;  %166 = vperm.xlu1 %641, %v35_v12  }
  0x50   :  { %496 = vperm.xlu0 %640, %v458_v24   ;;  %170 = vperm.xlu1 %641, %v36_v8  }
  0x54   :  { %642 = vset.pattern.permute.xlu1 %v669_v7 }
  0x55   :  { %228 = vperm.xlu1 %642, %v198_v25  }
  0x59   :  { %233 = vperm.xlu1 %642, %v199_v26  }
  0x5d   :  { %275 = vperm.xlu1 %642, %v265_v27  }
  0x61   :  { %285 = vperm.xlu1 %642, %v267_v28  }
  0x65   :  { %461 = vperm.xlu1 %642, %v451_v31  }
  0x69   :  { %295 = vperm.xlu1 %642, %v269_v32  }
  0x6d   :  { %300 = vperm.xlu1 %642, %v270_v33  }
  0x71   :  { %305 = vperm.xlu1 %642, %v271_v34  }
  0x75   :  { %310 = vperm.xlu1 %642, %v272_v35  }
  0x79   :  { %491 = vperm.xlu1 %642, %v457_v36  }
  0x81   :  { %v91_v37 = vpop.permute.xlu1 %90  ;;  %v143_v38 = vpop.permute.xlu0 %142 }
  0x82   :  { %v125_v58 = vmul.f32 %v834_v52, %v91_v37  ;;  %v177_v63 = vmul.f32 %v840_v59, %v143_v38 }
  0x85   :  { %v95_v39 = vpop.permute.xlu1 %94  ;;  %v151_v40 = vpop.permute.xlu0 %150 }
  0x86   :  { %v126_v61 = vmul.f32 %v834_v52, %v95_v39  ;;  %v179_v21 = vmul.f32 %v840_v59, %v151_v40 }
  0x89   :  { %v825_v41 = vpop.permute.xlu0 %162 }
  0x8a   :  { %v147_v42 = vpop.permute.xlu1 %146 }
  0x8b   :  { %v178_v4 = vmul.f32 %v840_v59, %v147_v42 }
  0x8e   :  { %v827_v44 = vpop.permute.xlu0 %106 }
  0x8f   :  { %v50_v46 = vpop.permute.xlu1 %49  ;;  %v129_v37 = vmul.f32 %v834_v52, %v827_v44 }
  0x90   :  { %v83_v18 = vmul.f32 %v836_v54, %v50_v46 }
  0x92   :  { %v829_v47 = vpop.permute.xlu0 %118 }
  0x93   :  { %v132_v49 = vmul.f32 %v834_v52, %v829_v47 }
  0x94   :  { %v99_v51 = vpop.permute.xlu1 %98 }
  0x95   :  { %v127_v17 = vmul.f32 %v834_v52, %v99_v51 }
  0x97   :  { %v40_v55 = vpop.permute.xlu0 %39  ;;  %v135_v22 = vadd.f32 %v127_v17, %v83_v18 }
  0x98   :  { %v103_v56 = vpop.permute.xlu1 %102  ;;  %v81_v57 = vmul.f32 %v836_v54, %v40_v55 }
  0x99   :  { %v128_v23 = vmul.f32 %v834_v52, %v103_v56  ;;  %v187_v27 = vadd.f32 %v179_v21, %v135_v22  ;;  %v182_v56 = vmul.f32 %v840_v59, %v825_v41 }
  0x9a   :  { %v133_v0 = vadd.f32 %v125_v58, %v81_v57 }
  0x9b   :  { %v45_v60 = vpop.permute.xlu0 %44 }
  0x9c   :  { %v82_v62 = vmul.f32 %v836_v54, %v45_v60  ;;  %v185_v5 = vadd.f32 %v177_v63, %v133_v0 }
  0x9d   :  { %v155_v1 = vpop.permute.xlu1 %154 }
  0x9e   :  { %v134_v2 = vadd.f32 %v126_v61, %v82_v62  ;;  %v180_v26 = vmul.f32 %v840_v59, %v155_v1 }
  0x9f   :  { %v55_v3 = vpop.permute.xlu0 %54 }
  0xa0   :  { %v186_v7 = vadd.f32 %v178_v4, %v134_v2  ;;  %v84_v19 = vmul.f32 %v836_v54, %v55_v3 }
  0xa2   :  { %v204_v6 = vpop.permute.xlu1 %203  ;;  %v136_v24 = vadd.f32 %v128_v23, %v84_v19 }
  0xa3   :  { %v241_v8 = vadd.f32 %v204_v6, %v185_v5  ;;  %v209_v9 = vpop.permute.xlu0 %208 }
  0xa4   :  { %v242_v10 = vadd.f32 %v209_v9, %v186_v7  ;;  %v188_v29 = vadd.f32 %v180_v26, %v136_v24 }
  0xa5   :  { %v249_v11 = vmax.f32 %v241_v8, 0.0 }
  0xa6   :  { %v250_v12 = vmax.f32 %v242_v10, 0.0  ;;  %v60_v13 = vpop.permute.xlu1 %59 }
  0xa7   :  { %v85_v38 = vmul.f32 %v836_v54, %v60_v13  ;;  %v70_v39 = vpop.permute.xlu0 %69  ;;  %v263_v13 = vld [vmem:[%s917_s3 + $0x30] sm:$0xff] }
  0xa8   :  { %v600_v14 = vpack.c.bf16 %v250_v12, %v249_v11  ;;  %v87_v60 = vmul.f32 %v836_v54, %v70_v39  ;;  %v262_v11 = vld [vmem:[%s917_s3 + $0x28] sm:$0xff]  ;;  %v259_v12 = vld [vmem:[%s917_s3 + $0x10] sm:$0xff] }
  0xa9   :  { %v137_v45 = vadd.f32 %v129_v37, %v85_v38 }
  0xaa   :  { %v65_v15 = vpop.permute.xlu1 %64  ;;  %601 = vmatprep.subr.bf16.mxu0 %v600_v14  ;;  %616 = vmatprep.subr.bf16.mxu1 %v600_v14 }
  0xab   :  { %603 = vmatpush3.bf16.msra.mxu0 %v600_v14  ;;  %620 = vmatpush3.bf16.msra.mxu1 %v600_v14  ;;  %v86_v46 = vmul.f32 %v836_v54, %v65_v15  ;;  %v224_v44 = vpop.permute.xlu0 %223  ;;  %v260_v14 = vld [vmem:[%s917_s3 + $0x18] sm:$0xff] }
  0xac   :  { %v264_v15 = vld [vmem:[%s917_s3 + $0x38] sm:$0xff] }
  0xaf   :  { %v111_v16 = vpop.permute.xlu1 %110  ;;  %v239_v3 = vpop.permute.xlu0 %238 }
  0xb0   :  { %v130_v40 = vmul.f32 %v834_v52, %v111_v16 }
  0xb2   :  { %v138_v50 = vadd.f32 %v130_v40, %v86_v46 }
  0xb3   :  { %v281_v16 = vpop.permute.xlu0 %280 }
  0xb4   :  { %v159_v20 = vpop.permute.xlu1 %158  ;;  %v190_v0 = vadd.f32 %v182_v56, %v138_v50 }
  0xb5   :  { %v181_v42 = vmul.f32 %v840_v59, %v159_v20 }
  0xb7   :  { %v189_v51 = vadd.f32 %v181_v42, %v137_v45  ;;  %v291_v18 = vpop.permute.xlu0 %290 }
  0xb9   :  { %v214_v25 = vpop.permute.xlu1 %213  ;;  %v245_v61 = vadd.f32 %v224_v44, %v189_v51 }
  0xba   :  { %v243_v28 = vadd.f32 %v214_v25, %v187_v27 }
  0xbb   :  { %v253_v5 = vmax.f32 %v245_v61, 0.0  ;;  %v467_v20 = vpop.permute.xlu0 %466 }
  0xbc   :  { %v251_v32 = vmax.f32 %v243_v28, 0.0 }
  0xbd   :  { %v219_v30 = vpop.permute.xlu1 %218 }
  0xbe   :  { %v244_v31 = vadd.f32 %v219_v30, %v188_v29 }
  0xbf   :  { %v472_v22 = vpop.permute.xlu0 %471 }
  0xc0   :  { %v252_v33 = vmax.f32 %v244_v31, 0.0 }
  0xc1   :  { %v75_v34 = vpop.permute.xlu1 %74 }
  0xc2   :  { %v604_v35 = vpack.c.bf16 %v252_v33, %v251_v32  ;;  %v88_v48 = vmul.f32 %v836_v54, %v75_v34 }
  0xc3   :  { %v477_v24 = vpop.permute.xlu0 %476 }
  0xc4   :  { %605 = vmatprep.subr.bf16.mxu0 %v604_v35  ;;  %617 = vmatprep.subr.bf16.mxu1 %v604_v35  ;;  %v140_v57 = vadd.f32 %v132_v49, %v88_v48 }
  0xc5   :  { %607 = vmatpush3.bf16.msra.mxu0 %v604_v35  ;;  %621 = vmatpush3.bf16.msra.mxu1 %v604_v35 }
  0xc6   :  { %v115_v36 = vpop.permute.xlu1 %114 }
  0xc7   :  { %v131_v58 = vmul.f32 %v834_v52, %v115_v36  ;;  %v482_v32 = vpop.permute.xlu0 %481 }
  0xc9   :  { %v139_v1 = vadd.f32 %v131_v58, %v87_v60 }
  0xcb   :  { %v167_v43 = vpop.permute.xlu1 %166 }
  0xcc   :  { %v183_v62 = vmul.f32 %v840_v59, %v167_v43 }
  0xce   :  { %v191_v7 = vadd.f32 %v183_v62, %v139_v1 }
  0xcf   :  { %v171_v53 = vpop.permute.xlu1 %170 }
  0xd0   :  { %v184_v55 = vmul.f32 %v840_v59, %v171_v53  ;;  %v258_v59 = vld [vmem:[%s917_s3 + $0x8] sm:$0xff] }
  0xd2   :  { %v192_v63 = vadd.f32 %v184_v55, %v140_v57 }
  0xd4   :  { %v229_v47 = vpop.permute.xlu1 %228  ;;  %v248_v4 = vadd.f32 %v239_v3, %v192_v63  ;;  %v487_v63 = vpop.permute.xlu0 %486 }
  0xd5   :  { %v246_v2 = vadd.f32 %v229_v47, %v190_v0 }
  0xd6   :  { %v256_v52 = vmax.f32 %v248_v4, 0.0 }
  0xd7   :  { %v254_v6 = vmax.f32 %v246_v2, 0.0 }
  0xd8   :  { %v234_v8 = vpop.permute.xlu1 %233 }
  0xd9   :  { %v608_v41 = vpack.c.bf16 %v254_v6, %v253_v5  ;;  %v247_v9 = vadd.f32 %v234_v8, %v191_v7 }
  0xdb   :  { %v255_v10 = vmax.f32 %v247_v9, 0.0  ;;  %609 = vmatprep.subr.bf16.mxu0 %v608_v41  ;;  %618 = vmatprep.subr.bf16.mxu1 %v608_v41  ;;  %v497_v9 = vpop.permute.xlu0 %496 }
  0xdc   :  { %611 = vmatpush3.bf16.msra.mxu0 %v608_v41  ;;  %622 = vmatpush3.bf16.msra.mxu1 %v608_v41  ;;  %v276_v17 = vpop.permute.xlu1 %275 }
  0xdd   :  { %v612_v54 = vpack.c.bf16 %v256_v52, %v255_v10 }
  0xdf   :  { %613 = vmatprep.subr.bf16.mxu0 %v612_v54  ;;  %619 = vmatprep.subr.bf16.mxu1 %v612_v54 }
  0xe0   :  { %615 = vmatpush3.bf16.msra.mxu0 %v612_v54  ;;  %623 = vmatpush3.bf16.msra.mxu1 %v612_v54  ;;  %v286_v19 = vpop.permute.xlu1 %285 }
  0xe3   :  { %589 = vmatmul.mubr.msk.f32.vlgmr.msra.gmra.mrb[0].mxu0 %vm313_vm0, %v258_v59  ;;  %595 = vmatmul.mubr.msk.f32.vlgmr.msra.gmra.mrb[0].mxu1 %vm313_vm0, %v262_v11 }
  0xe4   :  { %591 = vmatprep.mubr.msk.f32.mxu0 %vm313_vm0, %v259_v12  ;;  %597 = vmatprep.mubr.msk.f32.mxu1 %vm313_vm0, %v263_v13  ;;  %v462_v21 = vpop.permute.xlu1 %461 }
  0xe7   :  { %592 = vmatmul.mubr.msk.f32.gmra.mrb[2].mxu0 %vm313_vm0, %v260_v14  ;;  %598 = vmatmul.mubr.msk.f32.gmra.mrb[2].mxu1 %vm313_vm0, %v264_v15 }
  0xe8   :  { %v296_v23 = vpop.permute.xlu1 %295 }
  0xec   :  { %v301_v25 = vpop.permute.xlu1 %300 }
  0xf0   :  { %v306_v33 = vpop.permute.xlu1 %305 }
  0xf4   :  { %v311_v56 = vpop.permute.xlu1 %310 }
  0xf8   :  { %v492_v6 = vpop.permute.xlu1 %491 }
 0x1b6   :  { %v590_v26 = vpop.f32.mrb[0].mxu0  ;;  %v596_v27 = vpop.f32.mrb[0].mxu1 }
 0x1b7   :  { %v410_v28 = vadd.f32 %v590_v26, %v281_v16  ;;  %v404_v29 = vpop.f32.mrb[1].mxu0  ;;  %v424_v30 = vpop.f32.mrb[1].mxu1  ;;  %v430_v45 = vadd.f32 %v596_v27, %v301_v25 }
 0x1b8   :  { %v405_v31 = vadd.f32 %v404_v29, %v276_v17  ;;  %v425_v36 = vadd.f32 %v424_v30, %v296_v23 }
 0x1b9   :  { %v444_v34 = vmax.f32 %v410_v28, 0.0  ;;  %v448_v58 = vmax.f32 %v430_v45, 0.0 }
 0x1ba   :  { %v443_v35 = vmax.f32 %v405_v31, 0.0  ;;  %v593_v37 = vpop.f32.mrb[2].mxu0  ;;  %v599_v38 = vpop.f32.mrb[2].mxu1  ;;  %v447_v53 = vmax.f32 %v425_v36, 0.0 }
 0x1bb   :  { %v500_v39 = vmul.f32 %v467_v20, %v444_v34  ;;  %v420_v40 = vadd.f32 %v593_v37, %v291_v18  ;;  %v414_v42 = vpop.f32.mrb[3].mxu0  ;;  %v434_v43 = vpop.f32.mrb[3].mxu1  ;;  %v440_v61 = vadd.f32 %v599_v38, %v311_v56  ;;  %v504_v3 = vmul.f32 %v487_v63, %v448_v58 }
 0x1bc   :  { %v499_v46 = vmul.f32 %v462_v21, %v443_v35  ;;  %v415_v48 = vadd.f32 %v414_v42, %v286_v19  ;;  %v435_v55 = vadd.f32 %v434_v43, %v306_v33  ;;  %v503_v0 = vmul.f32 %v482_v32, %v447_v53 }
 0x1bd   :  { %v509_v49 = vsel %vm507_vm1, %v500_v39, 0.0  ;;  %v446_v50 = vmax.f32 %v420_v40, 0.0  ;;  %v450_v5 = vmax.f32 %v440_v61, 0.0  ;;  %v517_v52 = vsel %vm507_vm1, %v504_v3, 0.0 }
 0x1be   :  { %v508_v51 = vsel %vm507_vm1, %v499_v46, 0.0  ;;  %v445_v44 = vmax.f32 %v415_v48, 0.0  ;;  %v449_v1 = vmax.f32 %v435_v55, 0.0  ;;  %v515_v8 = vsel %vm507_vm1, %v503_v0, 0.0 }
 0x1bf   :  { %v510_v57 = vadd.f32 %v509_v49, %v508_v51  ;;  %v502_v60 = vmul.f32 %v477_v24, %v446_v50  ;;  %v506_v54 = vmul.f32 %v497_v9, %v450_v5  ;;  %v530_v20 = vstv %s920_s6 }
 0x1c0   :  { %v501_v62 = vmul.f32 %v472_v22, %v445_v44  ;;  %v505_v41 = vmul.f32 %v492_v6, %v449_v1 }
 0x1c1   :  { %v513_v4 = vsel %vm507_vm1, %v502_v60, 0.0  ;;  %v521_v13 = vsel %vm507_vm1, %v506_v54, 0.0 }
 0x1c2   :  { %v511_v47 = vsel %vm507_vm1, %v501_v62, 0.0  ;;  %v519_v11 = vsel %vm507_vm1, %v505_v41, 0.0 }
 0x1c3   :  { %v512_v2 = vadd.f32 %v511_v47, %v510_v57 }
 0x1c5   :  { %v514_v7 = vadd.f32 %v513_v4, %v512_v2 }
 0x1c7   :  { %v516_v10 = vadd.f32 %v515_v8, %v514_v7 }
 0x1c9   :  { %v518_v59 = vadd.f32 %v517_v52, %v516_v10 }
 0x1cb   :  { %v520_v12 = vadd.f32 %v519_v11, %v518_v59 }
 0x1cd   :  { %v522_v14 = vadd.f32 %v521_v13, %v520_v12 }
 0x1cf   :  { %v523_v15 = vrot.slane %v522_v14, 4 }
 0x1d1   :  { %v524_v16 = vadd.f32 %v523_v15, %v522_v14 }
 0x1d3   :  { %v525_v17 = vrot.slane %v524_v16, 2 }
 0x1d5   :  { %v526_v18 = vadd.f32 %v525_v17, %v524_v16 }
 0x1d7   :  { %v527_v19 = vrot.slane %v526_v18, 1 }
 0x1d9   :  { %v528_v21 = vadd.f32 %v527_v19, %v526_v18 }
 0x1db   :  { %v531_v22 = vadd.f32 %v530_v20, %v528_v21 }
 0x1dd   :  { %533 = vst.msk [vmem:[#allocation3] sm:$0x1] %vm532_vm2, %v531_v22 }
 0x1de   :  { %654 = shalt.err (!%p651_p4)
}
 0x1df   :  { %s655_s13 = scalar_lea.hbm %s921_s7, 16 }
 0x1e0   :  { %p656_p5 = scmp.ne.s32.totalorder %s921_s7, %s655_s13  ;;  %p659_p6 = scmp.lt.u32.totalorder %s655_s13, %s921_s7 }
 0x1e2   :  { %p661_p7 = pnand %p659_p6, %p656_p5 }
 0x1e4   :  { %664 = shalt.err (!%p661_p7)
}
 0x1e5   :  { %543 = dma.vmem_to_hbm [thread:$0]  %s541_s2, 16, %s921_s7, [#allocation4]  }
 0x1e6   :  { %665 = dma.done.wait [#allocation4], 16  }
 0x1e7   :  { %666 = vsyncadd [#allocation4], 4294967280 }
 0x1e8   :  { %547 = vsyncpa [#allocation4], 1 }

</bundles_post_ra>
